<compile_context>
chip_gen: v7x
topology: tpu7x:2x2x1
jax: 0.10.0
libtpu: 0.0.40
codegen_flags: <defaults>
</compile_context>

<pallas_src>
import math

import jax
import jax.numpy as jnp
from jax import lax
from jax.experimental import pallas as pl
from jax.experimental.pallas import tpu as pltpu


_COMPUTE_DTYPE = jnp.bfloat16
_VMEM_STEP_BUDGET = 24 << 20     # double-buffered per-step working-set cap (v7x-safe)


# ----------------------------- kernels --------------------------------------


def _embed_kernel(x_ref, xm_ref, w_ref, pe_ref, o_ref):
    # x_ref:  (TB, L, N)   one block of batches, native [L, N] layout
    # xm_ref: (TB, L, M)
    # w_ref:  (L, TD)      d_model tile of the weight (compute dtype)
    # pe_ref: (V, TD)      f32, pe[:V] with the Linear bias pre-folded
    # o_ref:  (TB, V, TD)
    w = w_ref[...]
    pe = pe_ref[...]
    for i in range(o_ref.shape[0]):                     # TB is small & static -> unrolled
        # Build the concatenated LHS once: [x_b | x_mark_b] along the variate axis.
        lhs = jnp.concatenate([x_ref[i], xm_ref[i]], axis=1)        # (L, V)
        # x^T @ W without materializing the transpose: contract the L axes
        # (dim 0 of both operands).  MXU handles transposed-LHS natively.
        acc = lax.dot_general(
            lhs, w,
            dimension_numbers=(((0,), (0,)), ((), ())),
            preferred_element_type=jnp.float32)                     # (V, TD) f32
        # Single full-block, unmasked store (no sublane-offset split).
        o_ref[i] = (acc + pe).astype(o_ref.dtype)


def _embed_kernel_nomark(x_ref, w_ref, pe_ref, o_ref):
    w = w_ref[...]
    pe = pe_ref[...]
    for i in range(o_ref.shape[0]):
        acc = lax.dot_general(
            x_ref[i], w,
            dimension_numbers=(((0,), (0,)), ((), ())),
            preferred_element_type=jnp.float32)                     # (N, TD) f32
        o_ref[i] = (acc + pe).astype(o_ref.dtype)


# --------------------------- tiling / params --------------------------------


def _pick_tiles(B, L, N, M, D, in_bytes, out_bytes):
    """Pick (TD, TB, working_set_bytes).

    Prefers TD == D (n_d == 1: x read from HBM exactly once, widest stores),
    else the largest multiple of 128 dividing D.  TB is the largest divisor of
    B (<= 8) whose double-buffered working set fits the VMEM budget; it is
    shrunk if that would leave fewer than 2 grid points (keep both v7x
    TensorCores / megacore halves busy).
    """
    V = N + M

    td_candidates = [D]
    t = (D // 128) * 128
    while t >= 128:
        if t != D and D % t == 0:
            td_candidates.append(t)
        t -= 128

    tb_candidates = [t for t in range(min(B, 8), 0, -1) if B % t == 0]

    def ws(td, tb):  # double-buffered per-step VMEM working set
        return 2 * (tb * L * (N + M) * in_bytes       # x + x_mark blocks
                    + L * td * in_bytes               # weight tile
                    + V * td * 4                      # pos-enc(+bias) tile, f32
                    + tb * V * td * out_bytes)        # output block

    for td in td_candidates:
        for tb in tb_candidates:
            if ws(td, tb) <= _VMEM_STEP_BUDGET:
                if (D // td) * (B // tb) < 2 and B > 1:
                    smaller = [c for c in tb_candidates if B // c >= 2]
                    if smaller:
                        tb = smaller[0]
                return td, tb, ws(td, tb)
    td, tb = td_candidates[-1], 1
    return td, tb, ws(td, tb)


def prepare_embedding_params(weight, bias, pe, num_variates,
                             compute_dtype=_COMPUTE_DTYPE):
    """Init-time preprocessing -- call ONCE, not per forward pass.

    weight: [L, D]  (= nn.Linear(c_in=L, d_model=D).weight transposed)
    bias:   [D]
    pe:     [max_len, D]
    Returns (weight_cast [L, D] in compute_dtype,
             pe_bias     [V, D] f32 with the Linear bias folded in).
    """
    V = num_variates
    assert pe.shape[0] >= V, "positional-encoding table shorter than N + M variates"
    pe_bias = pe[:V].astype(jnp.float32) + bias.astype(jnp.float32)[None, :]
    return weight.astype(compute_dtype), pe_bias


# ------------------------------ forward -------------------------------------


def data_embedding_inverted(x, x_mark, weight, pe_bias, *, out_dtype=None):
    """Forward of DataEmbedding_inverted (eval mode).

    x:       [B, L, N]
    x_mark:  [B, L, M] or None
    weight:  [L, D]   compute-dtype weight from prepare_embedding_params
    pe_bias: [V, D]   f32 pe[:V] + bias from prepare_embedding_params
    returns: [B, V, D]  (V = N + M)
    """
    B, L, N = x.shape
    D = weight.shape[1]
    M = 0 if x_mark is None else x_mark.shape[2]
    V = N + M
    assert pe_bias.shape == (V, D), "pe_bias must be pe[:N+M] + bias, shape [V, D]"

    out_dtype = x.dtype if out_dtype is None else out_dtype
    cdt = weight.dtype
    in_bytes = jnp.dtype(cdt).itemsize
    out_bytes = jnp.dtype(out_dtype).itemsize

    TD, TB, ws_bytes = _pick_tiles(B, L, N, M, D, in_bytes, out_bytes)
    n_d = D // TD
    n_b = B // TB

    # bf16 (or chosen compute dtype) at the pallas_call boundary: halves the
    # HBM traffic the kernel reads (no-op if already that dtype).
    x = x.astype(cdt)
    if x_mark is not None:
        x_mark = x_mark.astype(cdt)

    x_spec = pl.BlockSpec((TB, L, N), lambda d, b: (b, 0, 0))
    w_spec = pl.BlockSpec((L, TD), lambda d, b: (0, d))
    pe_spec = pl.BlockSpec((V, TD), lambda d, b: (0, d))
    o_spec = pl.BlockSpec((TB, V, TD), lambda d, b: (b, 0, d))

    if x_mark is None:
        kernel = _embed_kernel_nomark
        in_specs = [x_spec, w_spec, pe_spec]
        args = (x, weight, pe_bias)
    else:
        kernel = _embed_kernel
        xm_spec = pl.BlockSpec((TB, L, M), lambda d, b: (b, 0, 0))
        in_specs = [x_spec, xm_spec, w_spec, pe_spec]
        args = (x, x_mark, weight, pe_bias)

    # Raise the scoped-VMEM limit enough to keep double-buffering alive on
    # v5e (16 MiB default) while staying within v7x's 64 MiB physical VMEM.
    vmem_limit = int(min(48 << 20, max(32 << 20, ws_bytes + (8 << 20))))

    out = pl.pallas_call(
        kernel,
        out_shape=jax.ShapeDtypeStruct((B, V, D), out_dtype),
        grid_spec=pltpu.PrefetchScalarGridSpec(
            num_scalar_prefetch=0,
            grid=(n_d, n_b),          # d outer: weight/pe tiles stay resident
            in_specs=in_specs,
            out_specs=o_spec,
        ),
        compiler_params=pltpu.CompilerParams(
            dimension_semantics=("parallel", "parallel"),
            vmem_limit_bytes=vmem_limit,
        ),
    )(*args)
    # Dropout: module uses p=0.1, identity in eval mode.
    # TODO(synk): training-mode dropout (pltpu.prng_random_bits mask) not implemented.
    return out


# ------------------------------ helpers -------------------------------------


def make_positional_encoding(d_model, max_len=5000, dtype=jnp.float32):
    position = jnp.arange(max_len, dtype=jnp.float32)[:, None]            # [max_len, 1]
    div_term = jnp.exp(
        jnp.arange(0, d_model, 2, dtype=jnp.float32) * (-math.log(10000.0) / d_model)
    )                                                                     # [d_model/2]
    ang = position * div_term                                             # [max_len, d_model/2]
    pe = jnp.zeros((max_len, d_model), dtype=jnp.float32)
    pe = pe.at[:, 0::2].set(jnp.sin(ang))
    pe = pe.at[:, 1::2].set(jnp.cos(ang))
    return pe.astype(dtype)


if __name__ == "__main__":
    # Small shapes consistent with the module:
    #   B=2 batches, L=8 time steps (c_in for the Linear), N=4 variates,
    #   M=3 time-mark features, d_model=128 (lane-dense output tile).
    B, L, N, M, D = 2, 8, 4, 3, 128

    key = jax.random.PRNGKey(0)
    kx, km, kw, kb = jax.random.split(key, 4)

    x = jax.random.normal(kx, (B, L, N), dtype=jnp.float32)
    x_mark = jax.random.normal(km, (B, L, M), dtype=jnp.float32)

    # Deterministic parameter init (nn.Linear(c_in=L, d_model=D)); stored as [L, D].
    bound = 1.0 / math.sqrt(L)
    weight = jax.random.uniform(kw, (L, D), jnp.float32, -bound, bound)
    bias = jax.random.uniform(kb, (D,), jnp.float32, -bound, bound)
    pe = make_positional_encoding(D, max_len=5000)

    # f32 views of the bf16-rounded inputs for the reference (same rounding as
    # the kernel sees; MXU accumulates in f32 on both sides).
    xr = jnp.transpose(x.astype(_COMPUTE_DTYPE).astype(jnp.float32), (0, 2, 1))    # [B, N, L]
    xmr = jnp.transpose(x_mark.astype(_COMPUTE_DTYPE).astype(jnp.float32), (0, 2, 1))

    # --- with x_mark ---
    w_c, pe_b = prepare_embedding_params(weight, bias, pe, N + M)     # init-time, cached
    out = jax.block_until_ready(data_embedding_inverted(x, x_mark, w_c, pe_b))
    assert out.shape == (B, N + M, D)

    wf = w_c.astype(jnp.float32)
    ref = (
        jnp.einsum("bvl,ld->bvd", jnp.concatenate([xr, xmr], axis=1), wf,
                   precision=lax.Precision.HIGHEST)
        + bias[None, None, :]
        + pe[: N + M][None]
    )
    assert jnp.allclose(out, ref, atol=1e-2, rtol=1e-2), "mismatch vs reference (with mark)"

    # --- x_mark is None path ---
    w_c2, pe_b2 = prepare_embedding_params(weight, bias, pe, N)
    out2 = jax.block_until_ready(data_embedding_inverted(x, None, w_c2, pe_b2))
    ref2 = (
        jnp.einsum("bvl,ld->bvd", xr, wf, precision=lax.Precision.HIGHEST)
        + bias[None, None, :]
        + pe[:N][None]
    )
    assert out2.shape == (B, N, D)
    assert jnp.allclose(out2, ref2, atol=1e-2, rtol=1e-2), "mismatch vs reference (no mark)"

    print("KERNEL_OK")
</pallas_src>

<mosaic_0001>
module attributes {stable_mosaic.version = 11 : i64} {
  func.func @_embed_kernel(%arg0: i32, %arg1: i32, %arg2: memref<1x8x4xbf16, #tpu.memory_space<vmem>>, %arg3: memref<1x8x3xbf16, #tpu.memory_space<vmem>>, %arg4: memref<8x128xbf16, #tpu.memory_space<vmem>>, %arg5: memref<7x128xf32, #tpu.memory_space<vmem>>, %arg6: memref<1x7x128xf32, #tpu.memory_space<vmem>>) attributes {dimension_semantics = [#tpu.dimension_semantics<parallel>, #tpu.dimension_semantics<parallel>], iteration_bounds = array<i64: 1, 2>, scalar_prefetch = 0 : i64, scratch_operands = 0 : i64, tpu.core_type = #tpu.core_type<tc>, window_params = [{transform_indices = @transform_0, window_bounds = array<i64: 1, 8, 4>}, {transform_indices = @transform_1, window_bounds = array<i64: 1, 8, 3>}, {transform_indices = @transform_2, window_bounds = array<i64: 8, 128>}, {transform_indices = @transform_3, window_bounds = array<i64: 7, 128>}, {transform_indices = @transform_4, window_bounds = array<i64: 1, 7, 128>}]} {
    %c0 = arith.constant 0 : index
    %c0_0 = arith.constant 0 : index
    %0 = vector.load %arg4[%c0, %c0_0] : memref<8x128xbf16, #tpu.memory_space<vmem>>, vector<8x128xbf16>
    %c0_1 = arith.constant 0 : index
    %c0_2 = arith.constant 0 : index
    %1 = vector.load %arg5[%c0_1, %c0_2] : memref<7x128xf32, #tpu.memory_space<vmem>>, vector<7x128xf32>
    %c0_3 = arith.constant 0 : index
    %c0_4 = arith.constant 0 : index
    %c0_5 = arith.constant 0 : index
    %2 = vector.load %arg2[%c0_3, %c0_4, %c0_5] : memref<1x8x4xbf16, #tpu.memory_space<vmem>>, vector<1x8x4xbf16>
    %3 = vector.shape_cast %2 : vector<1x8x4xbf16> to vector<8x4xbf16>
    %c0_6 = arith.constant 0 : index
    %c0_7 = arith.constant 0 : index
    %c0_8 = arith.constant 0 : index
    %4 = vector.load %arg3[%c0_6, %c0_7, %c0_8] : memref<1x8x3xbf16, #tpu.memory_space<vmem>>, vector<1x8x3xbf16>
    %5 = vector.shape_cast %4 : vector<1x8x3xbf16> to vector<8x3xbf16>
    %6 = tpu.concatenate %3, %5 in 1 : vector<8x4xbf16>, vector<8x3xbf16> -> vector<8x7xbf16>
    %cst = arith.constant dense<0.000000e+00> : vector<7x128xf32>
    %7 = tpu.matmul %6, %0, %cst {dimension_numbers = #tpu.dot_dimension_numbers<[0], [0], [1], [1], [0, 1, 1, 1], [], []>} : vector<8x7xbf16>, vector<8x128xbf16>, vector<7x128xf32> -> vector<7x128xf32>
    %8 = arith.addf %7, %1 : vector<7x128xf32>
    %c0_9 = arith.constant 0 : index
    %c0_10 = arith.constant 0 : index
    %c0_11 = arith.constant 0 : index
    %9 = vector.load %arg6[%c0_9, %c0_10, %c0_11] : memref<1x7x128xf32, #tpu.memory_space<vmem>>, vector<1x7x128xf32>
    %10 = vector.shape_cast %9 : vector<1x7x128xf32> to vector<7x128xf32>
    %11 = vector.shape_cast %8 : vector<7x128xf32> to vector<1x7x128xf32>
    tpu.vector_store %arg6[%c0_9, %c0_10, %c0_11], %11 {strides = array<i32>} : memref<1x7x128xf32, #tpu.memory_space<vmem>>, vector<1x7x128xf32>,
    return
  }
  func.func @transform_0(%arg0: i32, %arg1: i32) -> (i32, i32, i32) {
    %c0_i32 = arith.constant 0 : i32
    %c0_i32_0 = arith.constant 0 : i32
    %c0_i32_1 = arith.constant 0 : i32
    return %arg1, %c0_i32, %c0_i32_0 : i32, i32, i32
  }
  func.func @transform_1(%arg0: i32, %arg1: i32) -> (i32, i32, i32) {
    %c0_i32 = arith.constant 0 : i32
    %c0_i32_0 = arith.constant 0 : i32
    %c0_i32_1 = arith.constant 0 : i32
    return %arg1, %c0_i32, %c0_i32_0 : i32, i32, i32
  }
  func.func @transform_2(%arg0: i32, %arg1: i32) -> (i32, i32) {
    %c0_i32 = arith.constant 0 : i32
    %c0_i32_0 = arith.constant 0 : i32
    return %c0_i32, %arg0 : i32, i32
  }
  func.func @transform_3(%arg0: i32, %arg1: i32) -> (i32, i32) {
    %c0_i32 = arith.constant 0 : i32
    %c0_i32_0 = arith.constant 0 : i32
    return %c0_i32, %arg0 : i32, i32
  }
  func.func @transform_4(%arg0: i32, %arg1: i32) -> (i32, i32, i32) {
    %c0_i32 = arith.constant 0 : i32
    %c0_i32_0 = arith.constant 0 : i32
    return %arg1, %c0_i32, %arg0 : i32, i32, i32
  }
}

</mosaic_0001>

<bundles_post_ra>
// kernel: tpu_custom_call.1
= control target key start
LH: loop header
LB: loop body
LE: loop exit
PB: predicated region body
PF: predicated region fallthrough
CT: control target
= control target key end

     0   :  { %s561_s15 = smov 0   ;;  %s563_s16 = smov 0   ;;  %s603_s0 = inlined_call_operand.vmem [shape: bf16[2,8,4], index: 0, kind: input, shape index: {}]   ;;  %s604_s1 = inlined_call_operand.vmem [shape: bf16[2,8,3], index: 1, kind: input, shape index: {}]   ;;  %s605_s2 = inlined_call_operand.vmem [shape: bf16[8,128], index: 2, kind: input, shape index: {}]   ;;  %s606_s3 = inlined_call_operand.vmem [shape: f32[7,128], index: 3, kind: input, shape index: {}]   ;;  %s607_s4 = inlined_call_operand.vmem [shape: f32[2,7,128], index: 4, kind: output, shape index: {}]  }
   0x1   :  { %s565_s17 = smov 0  }
   0x2 LB: > { %s23_s18 = sadd.s32 1, %s527_s16  ;;  %p464_p0 = scmp.ge.s32.totalorder %s531_s17, 1  ;;  %s531_s17 = sphi %s565_s17, %s14_s17   ;;  %s527_s16 = sphi %s563_s16, %s609_s16   ;;  %s523_s15 = sphi %s561_s15, %s608_s15  }
   0x3   : > { %p24_p1 = scmp.ge.s32.totalorder %s23_s18, 2  ;;  %p202_p2 = scmp.lt.s32.totalorder %s531_s17, 3 }
   0x5   : > { %s611_s18 = smov (%p24_p1, %s23_s18), 0  ;;  %p203_p3 = pnand %p464_p0, %p202_p2 }
   0x6   : > { %p241_p4 = scmp.lt.s32.totalorder (!%p203_p3), %s523_s15, 1  ;;  %vm299_vm0 = vcmask (!%p203_p3), 1043456   ;;  %v533_v0 = vmov (!%p203_p3), 0.0   ;;  %v265_v1 = vld [vmem:[%s605_s2] sm:$0xf] (!%p203_p3)  ;;  %vm534_vm1 = vmmov (!%p203_p3), 0  }
   0x7   : > { %206 = sbr.rel (%p203_p3) target bundleno = 452 (0x1c4), region = 36  ;;  %474 = vmatprep.subr.bf16.mxu0 (!%p203_p3), %v533_v0  ;;  %v301_v2 = vsel (!%p203_p3), %vm299_vm0, %v265_v1, 0  ;;  %476 = vmatprep.mubr.msk.bf16.mxu0 (!%p203_p3), %vm534_vm1, %v533_v0  ;;  %s535_s25 = smov (!%p203_p3), 4   ;;  %vm274_vm2 = vcmask (!%p203_p3), 31744   ;;  %vm295_vm3 = vcmask (!%p203_p3), 64512  }
   0x8   : > { %475 = vmatpush3.bf16.msra.mxu0 (!%p203_p3), %v301_v2  ;;  %v266_v8 = vld [vmem:[%s606_s3] sm:$0x7f] (!%p203_p3) }
   0xe   : > { %s613_s15 = smov (!%p241_p4, %s523_s15), 1 }
   0xf   : > { %s465_s21 = sshll.u32 %s613_s15, 2  ;;  %s467_s29 = sshll.u32 %s613_s15, 3 }
  0x10   : > { %s248_s24 = scalar_lea.vmem %s604_s1, %s465_s21  ;;  %s244_s28 = scalar_lea.vmem %s603_s0, %s465_s21 }
  0x11   : > { %v508_v3 = vld [vmem:[%s248_s24] ss:$0 sps:$4 sm:$0xff]   ;;  %s263_s8 = scalar_lea.vmem %s607_s4, %s467_s29 }
  0x12   : > { %272 = vrot.lane.b32.xlu0 %v508_v3, %s535_s25  ;;  %v267_v4 = vld [vmem:[%s244_s28] sm:$0xf] }
  0x84   : > { %v273_v5 = vpop.permute.xlu0 %272 }
  0x85   : > { %v277_v6 = vsel %vm274_vm2, %v267_v4, %v273_v5 }
  0x86   : > { %279 = vxpose.xlu0.c.b16.start.end [1/1] (short) (narrow) %v277_v6, 16 }
  0xec   : > { %v287_v7 = vpop.trf.xlu0 }
  0xed   : > { %477 = vmatmul.mubr.msk.bf16.vlgmr.msra.gmra.mrb[0].mxu0 %vm295_vm3, %v287_v7 }
 0x1c0   : > { %v337_v9 = vpop.f32.mrb[0].mxu0 }
 0x1c1   : > { %v338_v10 = vadd.f32 %v337_v9, %v266_v8  ;;  %v478_v11 = vpop.f32.mrb[1].mxu0 }
 0x1c2   : > { %v340_v12 = vpop.f32.mrb[2].mxu0 }
 0x1c3   : > { %343 = vst [vmem:[%s263_s8] sm:$0x7f] %v338_v10  ;;  %v479_v13 = vpop.f32.mrb[3].mxu0 }
 0x1c4 PF: > { %s14_s17 = sadd.s32 1, %s531_s17   ;;  %s608_s15 = smov %s527_s16 }
 0x1c5   : > { %p11_p5 = scmp.ge.s32.totalorder %s14_s17, 4   ;;  %s609_s16 = smov %s611_s18 }
 0x1c7   :  { %13 = sbr.rel (!%p11_p5) target bundleno = 2 (0x2), region = 75 }

</bundles_post_ra>
